<compile_context>
chip_gen: v6e
topology: v6e:2x2x1
jax: 0.10.0
libtpu: 0.0.40
codegen_flags: <defaults>
</compile_context>

<pallas_src>
import math
import functools

import jax
import jax.numpy as jnp
from jax import lax
from jax.experimental import pallas as pl
from jax.experimental.pallas import tpu as pltpu

LORA_ALPHA = 32
LORA_R = 8
LORA_SCALE = LORA_ALPHA / LORA_R  # 4.0

_NEG_BIG = -1e30  # finite mask value: no inf arithmetic / NaN risk


def _attention_kernel(x_ref, wqkv_ref, wo_ref, out_ref, k_ref, v_ref,
                      q_scr, k_scr, v_scr, *, tq):
    # x_ref:    (Bb, T, D)   block of batch elements (input dtype)
    # wqkv_ref: (D, 3D)      LoRA-folded, QKV-fused weight, bf16, scale folded into Wq
    # wo_ref:   (D, D)       output projection weight, bf16
    # out/k/v_ref: (Bb,T,D)  three separate lane-dense outputs
    # q/k/v_scr: (Bb,T,D)    bf16 scratch holding the SDPA matmul operands
    Bb, T, D = x_ref.shape
    nq = T // tq

    # ---- fused QKV projection: one matmul, bf16 operands, f32 accumulation ----
    x2 = x_ref[...].astype(jnp.bfloat16).reshape(Bb * T, D)
    qkv = jnp.dot(x2, wqkv_ref[...], preferred_element_type=jnp.float32)  # (Bb*T, 3D) f32
    qkv = qkv.reshape(Bb, T, 3 * D)

    # k / v caches stored immediately (ends the f32 qkv live range early).
    k_ref[...] = qkv[..., D:2 * D].astype(k_ref.dtype)
    v_ref[...] = qkv[..., 2 * D:].astype(v_ref.dtype)

    # bf16 copies for the SDPA matmuls (q already carries the 1/sqrt(D) scale).
    q_scr[...] = qkv[..., :D].astype(jnp.bfloat16)
    k_scr[...] = qkv[..., D:2 * D].astype(jnp.bfloat16)
    v_scr[...] = qkv[..., 2 * D:].astype(jnp.bfloat16)

    # ---- flash-style causal SDPA over KV tiles (online softmax) ---------------
    # TODO(synk): dropout_p (training mode) not modeled; eval semantics (p=0).
    def kv_step(q_t, ki, m, l, acc, masked):
        k0 = pl.multiple_of(ki * tq, tq)
        k_t = k_scr[:, pl.ds(k0, tq), :]                     # bf16 (Bb, tq, D)
        v_t = v_scr[:, pl.ds(k0, tq), :]
        s = jnp.einsum("bqd,bkd->bqk", q_t, k_t,
                       preferred_element_type=jnp.float32)   # (Bb, tq, tq) f32
        if masked:  # only the diagonal tile needs the causal mask
            row = lax.broadcasted_iota(jnp.int32, (tq, tq), 0)
            col = lax.broadcasted_iota(jnp.int32, (tq, tq), 1)
            s = jnp.where((col <= row)[None], s, _NEG_BIG)
        m_new = jnp.maximum(m, jnp.max(s, axis=-1, keepdims=True))
        a = jnp.exp(m - m_new)
        p = jnp.exp(s - m_new)                               # unnormalized
        l_new = a * l + jnp.sum(p, axis=-1, keepdims=True)
        acc_new = a * acc + jnp.einsum("bqk,bkd->bqd", p.astype(jnp.bfloat16), v_t,
                                       preferred_element_type=jnp.float32)
        return m_new, l_new, acc_new

    for qi in range(nq):                                     # static q-tile loop
        q0 = qi * tq
        q_t = q_scr[:, q0:q0 + tq, :]                        # bf16 (Bb, tq, D)
        m = jnp.full((Bb, tq, 1), _NEG_BIG, jnp.float32)
        l = jnp.zeros((Bb, tq, 1), jnp.float32)
        acc = jnp.zeros((Bb, tq, D), jnp.float32)

        if qi > 0:
            # fully visible tiles strictly below the diagonal; tiles above the
            # diagonal are never visited (causal tile skipping).
            def body(ki, carry, _q_t=q_t):
                return kv_step(_q_t, ki, *carry, masked=False)
            m, l, acc = lax.fori_loop(0, qi, body, (m, l, acc))

        # diagonal tile with the local causal mask
        m, l, acc = kv_step(q_t, qi, m, l, acc, masked=True)

        # normalize AFTER the PV accumulation: (Bb,tq,D) multiply, not (Bb,tq,T)
        attn = acc * pl.reciprocal(l, approx=True)

        # ---- output projection for this q tile (bf16 operands, f32 acc) -------
        out_tile = jnp.dot(attn.astype(jnp.bfloat16).reshape(Bb * tq, D),
                           wo_ref[...], preferred_element_type=jnp.float32)
        out_ref[:, q0:q0 + tq, :] = out_tile.reshape(Bb, tq, D).astype(out_ref.dtype)


@functools.partial(jax.jit, static_argnames=("block_b",))
def enterprise_attention(x, params, block_b=None):
    """x: (B, T, D).  Returns (out (B,T,D), (k, v) each (B,1,T,D))."""
    B, T, D = x.shape
    x_bytes = x.dtype.itemsize

    # Query-tile size: lane/sublane friendly 128 when it divides T, else full T.
    tq = 128 if T % 128 == 0 else T

    # bf16, single-buffered (whole-array VMEM residency)
    weight_bytes = 2 * (3 * D * D + D * D)

    def per_step_bytes(bb):
        return (2 * bb * T * D * x_bytes          # x block (double-buffered)
                + 2 * 3 * bb * T * D * x_bytes    # out/k/v blocks (double-buffered)
                + 3 * bb * T * D * 2              # q/k/v bf16 scratch
                + 2 * bb * tq * D * 4)            # f32 acc / projected tile

    if block_b is None:
        # VMEM budget with headroom under v7x's 64 MiB; prefer >=8 grid steps
        # (2 TCs x >=4 pipelined steps each) when B allows it.
        budget = 40 * 2**20
        target_steps = min(B, 8)
        block_b = 1
        for bb in range(B, 0, -1):
            if B % bb:
                continue
            if (B // bb) >= target_steps and weight_bytes + per_step_bytes(bb) <= budget:
                block_b = bb
                break
    assert B % block_b == 0

    vmem_limit = int(min(64 * 2**20,
                         max(16 * 2**20, 2 * (weight_bytes + per_step_bytes(block_b)))))

    # Fold LoRA adapters into the base weights (eval-mode, once per trace), fuse
    # Q/K/V into one (D, 3D) weight, fold the 1/sqrt(D) softmax scale into Wq,
    # and cast to bf16 for the MXU.
    def fold(W, A, Bm):
        return W + LORA_SCALE * (A @ Bm)

    scale = 1.0 / math.sqrt(D)
    w_qkv = jnp.concatenate(
        [
            fold(params["Wq"], params["Aq"], params["Bq"]) * scale,
            fold(params["Wk"], params["Ak"], params["Bk"]),
            fold(params["Wv"], params["Av"], params["Bv"]),
        ],
        axis=-1,
    ).astype(jnp.bfloat16)                                   # (D, 3D)
    wo = params["Wo"].astype(jnp.bfloat16)                   # (D, D)

    # TODO(synk): for very large D (weights >~ VMEM even in bf16) add a reduction
    # grid axis over D with streamed weight tiles; for very long T stream K/V
    # tiles from HBM instead of holding (Bb,T,D) scratch resident.
    kernel = functools.partial(_attention_kernel, tq=tq)

    out, k, v = pl.pallas_call(
        kernel,
        out_shape=(
            jax.ShapeDtypeStruct((B, T, D), x.dtype),
            jax.ShapeDtypeStruct((B, T, D), x.dtype),
            jax.ShapeDtypeStruct((B, T, D), x.dtype),
        ),
        grid_spec=pltpu.PrefetchScalarGridSpec(
            num_scalar_prefetch=0,
            grid=(B // block_b,),
            in_specs=[
                pl.BlockSpec((block_b, T, D), lambda b: (b, 0, 0)),       # x
                # grid-invariant weights: one whole-array VMEM copy, no double buffer
                pl.BlockSpec(memory_space=pltpu.MemorySpace.VMEM),        # W_qkv (bf16)
                pl.BlockSpec(memory_space=pltpu.MemorySpace.VMEM),        # Wo    (bf16)
            ],
            # Three separate outputs: no post-kernel slicing / extra HBM pass.
            # (For D < 128, as in the toy test, each store is lane-masked, but the
            #  wrapper-side re-slicing of a packed tensor would cost more overall.)
            out_specs=[
                pl.BlockSpec((block_b, T, D), lambda b: (b, 0, 0)),
                pl.BlockSpec((block_b, T, D), lambda b: (b, 0, 0)),
                pl.BlockSpec((block_b, T, D), lambda b: (b, 0, 0)),
            ],
            scratch_shapes=[
                pltpu.VMEM((block_b, T, D), jnp.bfloat16),   # q (pre-scaled)
                pltpu.VMEM((block_b, T, D), jnp.bfloat16),   # k
                pltpu.VMEM((block_b, T, D), jnp.bfloat16),   # v
            ],
        ),
        compiler_params=pltpu.CompilerParams(
            dimension_semantics=("parallel",),
            vmem_limit_bytes=vmem_limit,
        ),
    )(x, w_qkv, wo)

    return out, (k[:, None], v[:, None])   # k, v -> (B, 1, T, D)


def init_params(key, d_model):
    """Deterministic parameter init mirroring the PyTorch module's shapes.
    All matrices stored pre-transposed as (in_features, out_features)."""
    D, r = d_model, LORA_R
    keys = jax.random.split(key, 10)

    def xavier_normal(k, shape, gain=1.0):
        fan_in, fan_out = shape
        std = gain * math.sqrt(2.0 / (fan_in + fan_out))
        return std * jax.random.normal(k, shape, dtype=jnp.float32)

    return {
        "Wq": xavier_normal(keys[0], (D, D), gain=1.0 / math.sqrt(2.0)),
        "Wk": xavier_normal(keys[1], (D, D)),
        "Wv": xavier_normal(keys[2], (D, D)),
        "Wo": xavier_normal(keys[3], (D, D)),  # nn.Linear default init differs; synthetic
        "Aq": 0.02 * jax.random.normal(keys[4], (D, r), dtype=jnp.float32),
        "Bq": 0.02 * jax.random.normal(keys[5], (r, D), dtype=jnp.float32),
        "Ak": 0.02 * jax.random.normal(keys[6], (D, r), dtype=jnp.float32),
        "Bk": 0.02 * jax.random.normal(keys[7], (r, D), dtype=jnp.float32),
        "Av": 0.02 * jax.random.normal(keys[8], (D, r), dtype=jnp.float32),
        "Bv": 0.02 * jax.random.normal(keys[9], (r, D), dtype=jnp.float32),
    }


def reference(x, params):
    """Pure-JAX f32 reference matching the PyTorch forward (eval mode, un-folded LoRA)."""
    B, T, D = x.shape

    def proj(W, A, Bm):
        return x @ W + LORA_SCALE * ((x @ A) @ Bm)

    q = proj(params["Wq"], params["Aq"], params["Bq"])
    k = proj(params["Wk"], params["Ak"], params["Bk"])
    v = proj(params["Wv"], params["Av"], params["Bv"])
    s = jnp.einsum("btd,bsd->bts", q, k) / math.sqrt(D)
    mask = jnp.tril(jnp.ones((T, T), dtype=bool))
    s = jnp.where(mask[None], s, -jnp.inf)
    p = jax.nn.softmax(s, axis=-1)
    attn = jnp.einsum("bts,bsd->btd", p, v)
    return attn @ params["Wo"], (k[:, None], v[:, None])


if __name__ == "__main__":
    # Small config: d_model=32 (n_head divides it), B=2, T=8.
    B, T, D = 2, 8, 32
    key = jax.random.PRNGKey(0)
    kx, kp = jax.random.split(key)
    x = jax.random.normal(kx, (B, T, D), dtype=jnp.float32)
    params = init_params(kp, D)

    out, (k_cache, v_cache) = enterprise_attention(x, params)
    jax.block_until_ready((out, k_cache, v_cache))

    ref_out, (ref_k, ref_v) = reference(x, params)
    assert out.shape == (B, T, D)
    assert k_cache.shape == (B, 1, T, D) and v_cache.shape == (B, 1, T, D)
    # Kernel uses bf16 MXU operands (f32 accumulation) + EUP approximate reciprocal
    # in the softmax, vs. an all-f32 reference -> loose tolerances.
    assert jnp.allclose(out, ref_out, atol=3e-2, rtol=3e-2)
    assert jnp.allclose(k_cache, ref_k, atol=2e-2, rtol=2e-2)
    assert jnp.allclose(v_cache, ref_v, atol=2e-2, rtol=2e-2)
    print("KERNEL_OK")
</pallas_src>

<mosaic_0001>
module attributes {stable_mosaic.version = 11 : i64} {
  func.func @_attention_kernel(%arg0: i32, %arg1: memref<1x8x32xf32, #tpu.memory_space<vmem>>, %arg2: memref<32x96xbf16, #tpu.memory_space<vmem>>, %arg3: memref<32x32xbf16, #tpu.memory_space<vmem>>, %arg4: memref<1x8x32xf32, #tpu.memory_space<vmem>>, %arg5: memref<1x8x32xf32, #tpu.memory_space<vmem>>, %arg6: memref<1x8x32xf32, #tpu.memory_space<vmem>>, %arg7: memref<1x8x32xbf16, #tpu.memory_space<vmem>>, %arg8: memref<1x8x32xbf16, #tpu.memory_space<vmem>>, %arg9: memref<1x8x32xbf16, #tpu.memory_space<vmem>>) attributes {dimension_semantics = [#tpu.dimension_semantics<parallel>], iteration_bounds = array<i64: 2>, scalar_prefetch = 0 : i64, scratch_operands = 3 : i64, tpu.core_type = #tpu.core_type<tc>, window_params = [{transform_indices = @transform_0, window_bounds = array<i64: 1, 8, 32>}, {pipeline_mode = #tpu.pipeline_mode<synchronous>, transform_indices = @transform_1, window_bounds = array<i64: 32, 96>}, {pipeline_mode = #tpu.pipeline_mode<synchronous>, transform_indices = @transform_2, window_bounds = array<i64: 32, 32>}, {transform_indices = @transform_3, window_bounds = array<i64: 1, 8, 32>}, {transform_indices = @transform_4, window_bounds = array<i64: 1, 8, 32>}, {transform_indices = @transform_5, window_bounds = array<i64: 1, 8, 32>}]} {
    %c0 = arith.constant 0 : index
    %c0_0 = arith.constant 0 : index
    %c0_1 = arith.constant 0 : index
    %0 = vector.load %arg1[%c0, %c0_0, %c0_1] : memref<1x8x32xf32, #tpu.memory_space<vmem>>, vector<1x8x32xf32>
    %1 = arith.truncf %0 : vector<1x8x32xf32> to vector<1x8x32xbf16>
    %2 = vector.shape_cast %1 : vector<1x8x32xbf16> to vector<8x32xbf16>
    %c0_2 = arith.constant 0 : index
    %c0_3 = arith.constant 0 : index
    %3 = vector.load %arg2[%c0_2, %c0_3] : memref<32x96xbf16, #tpu.memory_space<vmem>>, vector<32x96xbf16>
    %cst = arith.constant dense<0.000000e+00> : vector<8x96xf32>
    %4 = tpu.matmul %2, %3, %cst {dimension_numbers = #tpu.dot_dimension_numbers<[1], [0], [0], [1], [0, 0, 1, 1], [], []>} : vector<8x32xbf16>, vector<32x96xbf16>, vector<8x96xf32> -> vector<8x96xf32>
    %5 = vector.shape_cast %4 : vector<8x96xf32> to vector<1x8x96xf32>
    %6 = vector.extract_strided_slice %5 {offsets = [0, 0, 32], sizes = [1, 8, 32], strides = [1, 1, 1]} : vector<1x8x96xf32> to vector<1x8x32xf32>
    %c0_4 = arith.constant 0 : index
    %c0_5 = arith.constant 0 : index
    %c0_6 = arith.constant 0 : index
    %7 = vector.load %arg5[%c0_4, %c0_5, %c0_6] : memref<1x8x32xf32, #tpu.memory_space<vmem>>, vector<1x8x32xf32>
    tpu.vector_store %arg5[%c0_4, %c0_5, %c0_6], %6 {strides = array<i32>} : memref<1x8x32xf32, #tpu.memory_space<vmem>>, vector<1x8x32xf32>,
    %8 = vector.extract_strided_slice %5 {offsets = [0, 0, 64], sizes = [1, 8, 32], strides = [1, 1, 1]} : vector<1x8x96xf32> to vector<1x8x32xf32>
    %c0_7 = arith.constant 0 : index
    %c0_8 = arith.constant 0 : index
    %c0_9 = arith.constant 0 : index
    %9 = vector.load %arg6[%c0_7, %c0_8, %c0_9] : memref<1x8x32xf32, #tpu.memory_space<vmem>>, vector<1x8x32xf32>
    tpu.vector_store %arg6[%c0_7, %c0_8, %c0_9], %8 {strides = array<i32>} : memref<1x8x32xf32, #tpu.memory_space<vmem>>, vector<1x8x32xf32>,
    %10 = vector.extract_strided_slice %5 {offsets = [0, 0, 0], sizes = [1, 8, 32], strides = [1, 1, 1]} : vector<1x8x96xf32> to vector<1x8x32xf32>
    %11 = arith.truncf %10 : vector<1x8x32xf32> to vector<1x8x32xbf16>
    %c0_10 = arith.constant 0 : index
    %c0_11 = arith.constant 0 : index
    %c0_12 = arith.constant 0 : index
    %12 = vector.load %arg7[%c0_10, %c0_11, %c0_12] : memref<1x8x32xbf16, #tpu.memory_space<vmem>>, vector<1x8x32xbf16>
    tpu.vector_store %arg7[%c0_10, %c0_11, %c0_12], %11 {strides = array<i32>} : memref<1x8x32xbf16, #tpu.memory_space<vmem>>, vector<1x8x32xbf16>,
    %13 = vector.extract_strided_slice %5 {offsets = [0, 0, 32], sizes = [1, 8, 32], strides = [1, 1, 1]} : vector<1x8x96xf32> to vector<1x8x32xf32>
    %14 = arith.truncf %13 : vector<1x8x32xf32> to vector<1x8x32xbf16>
    %c0_13 = arith.constant 0 : index
    %c0_14 = arith.constant 0 : index
    %c0_15 = arith.constant 0 : index
    %15 = vector.load %arg8[%c0_13, %c0_14, %c0_15] : memref<1x8x32xbf16, #tpu.memory_space<vmem>>, vector<1x8x32xbf16>
    tpu.vector_store %arg8[%c0_13, %c0_14, %c0_15], %14 {strides = array<i32>} : memref<1x8x32xbf16, #tpu.memory_space<vmem>>, vector<1x8x32xbf16>,
    %16 = vector.extract_strided_slice %5 {offsets = [0, 0, 64], sizes = [1, 8, 32], strides = [1, 1, 1]} : vector<1x8x96xf32> to vector<1x8x32xf32>
    %17 = arith.truncf %16 : vector<1x8x32xf32> to vector<1x8x32xbf16>
    %c0_16 = arith.constant 0 : index
    %c0_17 = arith.constant 0 : index
    %c0_18 = arith.constant 0 : index
    %18 = vector.load %arg9[%c0_16, %c0_17, %c0_18] : memref<1x8x32xbf16, #tpu.memory_space<vmem>>, vector<1x8x32xbf16>
    tpu.vector_store %arg9[%c0_16, %c0_17, %c0_18], %17 {strides = array<i32>} : memref<1x8x32xbf16, #tpu.memory_space<vmem>>, vector<1x8x32xbf16>,
    %c0_19 = arith.constant 0 : index
    %c0_20 = arith.constant 0 : index
    %c0_21 = arith.constant 0 : index
    %19 = vector.load %arg7[%c0_19, %c0_20, %c0_21] : memref<1x8x32xbf16, #tpu.memory_space<vmem>>, vector<1x8x32xbf16>
    %cst_22 = arith.constant -1.000000e+30 : f32
    %20 = vector.broadcast %cst_22 : f32 to vector<1x8x1xf32>
    %cst_23 = arith.constant 0.000000e+00 : f32
    %21 = vector.broadcast %cst_23 : f32 to vector<1x8x1xf32>
    %cst_24 = arith.constant 0.000000e+00 : f32
    %22 = vector.broadcast %cst_24 : f32 to vector<1x8x32xf32>
    %c0_i32 = arith.constant 0 : i32
    %23 = tpu.assume_multiple %c0_i32, 8 : i32
    %c0_25 = arith.constant 0 : index
    %24 = arith.index_cast %23 : i32 to index
    %c0_26 = arith.constant 0 : index
    %25 = vector.load %arg8[%c0_25, %24, %c0_26] : memref<1x8x32xbf16, #tpu.memory_space<vmem>>, vector<1x8x32xbf16>
    %c0_27 = arith.constant 0 : index
    %26 = arith.index_cast %23 : i32 to index
    %c0_28 = arith.constant 0 : index
    %27 = vector.load %arg9[%c0_27, %26, %c0_28] : memref<1x8x32xbf16, #tpu.memory_space<vmem>>, vector<1x8x32xbf16>
    "tpu.trace_start"() <{level = 10 : i32, message = "bqd,bkd->bqk"}> : () -> ()
    %cst_29 = arith.constant dense<0.000000e+00> : vector<1x8x8xf32>
    %28 = tpu.matmul %19, %25, %cst_29 {dimension_numbers = #tpu.dot_dimension_numbers<[2], [2], [1], [1], [0, 0, 0, 1, 1, 1], [0], [0]>} : vector<1x8x32xbf16>, vector<1x8x32xbf16>, vector<1x8x8xf32> -> vector<1x8x8xf32>
    "tpu.trace_stop"() : () -> ()
    %29 = tpu.iota {dimensions = array<i32: 0>} : vector<8x8xi32>
    %30 = tpu.iota {dimensions = array<i32: 1>} : vector<8x8xi32>
    %31 = arith.cmpi sle, %30, %29 : vector<8x8xi32>
    %32 = vector.shape_cast %31 : vector<8x8xi1> to vector<1x8x8xi1>
    %cst_30 = arith.constant -1.000000e+30 : f32
    %33 = vector.broadcast %cst_30 : f32 to vector<1x8x8xf32>
    %34 = arith.select %32, %28, %33 : vector<1x8x8xi1>, vector<1x8x8xf32>
    %cst_31 = arith.constant dense<0xFF800000> : vector<1x8xf32>
    %35 = vector.multi_reduction <maximumf>, %34, %cst_31 [2] : vector<1x8x8xf32> to vector<1x8xf32>
    %36 = vector.shape_cast %35 : vector<1x8xf32> to vector<1x8x1xf32>
    %37 = arith.maximumf %20, %36 : vector<1x8x1xf32>
    %38 = arith.subf %20, %37 : vector<1x8x1xf32>
    %39 = math.exp %38 : vector<1x8x1xf32>
    %40 = vector.broadcast %37 : vector<1x8x1xf32> to vector<1x8x8xf32>
    %41 = arith.subf %34, %40 : vector<1x8x8xf32>
    %42 = math.exp %41 : vector<1x8x8xf32>
    %43 = arith.mulf %39, %21 : vector<1x8x1xf32>
    %cst_32 = arith.constant dense<0.000000e+00> : vector<1x8xf32>
    %44 = vector.multi_reduction <add>, %42, %cst_32 [2] : vector<1x8x8xf32> to vector<1x8xf32>
    %45 = vector.shape_cast %44 : vector<1x8xf32> to vector<1x8x1xf32>
    %46 = arith.addf %43, %45 : vector<1x8x1xf32>
    %47 = vector.broadcast %39 : vector<1x8x1xf32> to vector<1x8x32xf32>
    %48 = arith.mulf %47, %22 : vector<1x8x32xf32>
    %49 = arith.truncf %42 : vector<1x8x8xf32> to vector<1x8x8xbf16>
    "tpu.trace_start"() <{level = 10 : i32, message = "bqk,bkd->bqd"}> : () -> ()
    %cst_33 = arith.constant dense<0.000000e+00> : vector<1x8x32xf32>
    %50 = tpu.matmul %49, %27, %cst_33 {dimension_numbers = #tpu.dot_dimension_numbers<[2], [1], [1], [2], [0, 0, 0, 1, 1, 2], [0], [0]>} : vector<1x8x8xbf16>, vector<1x8x32xbf16>, vector<1x8x32xf32> -> vector<1x8x32xf32>
    "tpu.trace_stop"() : () -> ()
    %51 = arith.addf %48, %50 : vector<1x8x32xf32>
    %52 = tpu.reciprocal %46 {approx = true} : vector<1x8x1xf32> -> vector<1x8x1xf32>
    %53 = vector.broadcast %52 : vector<1x8x1xf32> to vector<1x8x32xf32>
    %54 = arith.mulf %51, %53 : vector<1x8x32xf32>
    %55 = arith.truncf %54 : vector<1x8x32xf32> to vector<1x8x32xbf16>
    %56 = vector.shape_cast %55 : vector<1x8x32xbf16> to vector<8x32xbf16>
    %c0_34 = arith.constant 0 : index
    %c0_35 = arith.constant 0 : index
    %57 = vector.load %arg3[%c0_34, %c0_35] : memref<32x32xbf16, #tpu.memory_space<vmem>>, vector<32x32xbf16>
    %cst_36 = arith.constant dense<0.000000e+00> : vector<8x32xf32>
    %58 = tpu.matmul %56, %57, %cst_36 {dimension_numbers = #tpu.dot_dimension_numbers<[1], [0], [0], [1], [0, 0, 1, 1], [], []>} : vector<8x32xbf16>, vector<32x32xbf16>, vector<8x32xf32> -> vector<8x32xf32>
    %59 = vector.shape_cast %58 : vector<8x32xf32> to vector<1x8x32xf32>
    %c0_37 = arith.constant 0 : index
    %c0_38 = arith.constant 0 : index
    %c0_39 = arith.constant 0 : index
    %60 = vector.load %arg4[%c0_37, %c0_38, %c0_39] : memref<1x8x32xf32, #tpu.memory_space<vmem>>, vector<1x8x32xf32>
    tpu.vector_store %arg4[%c0_37, %c0_38, %c0_39], %59 {strides = array<i32>} : memref<1x8x32xf32, #tpu.memory_space<vmem>>, vector<1x8x32xf32>,
    return
  }
  func.func @transform_0(%arg0: i32) -> (i32, i32, i32) {
    %c0_i32 = arith.constant 0 : i32
    %c0_i32_0 = arith.constant 0 : i32
    %c0_i32_1 = arith.constant 0 : i32
    return %arg0, %c0_i32, %c0_i32_0 : i32, i32, i32
  }
  func.func @transform_1(%arg0: i32) -> (i32, i32) {
    %c0_i32 = arith.constant 0 : i32
    %c0_i32_0 = arith.constant 0 : i32
    %c0_i32_1 = arith.constant 0 : i32
    return %c0_i32, %c0_i32_0 : i32, i32
  }
  func.func @transform_2(%arg0: i32) -> (i32, i32) {
    %c0_i32 = arith.constant 0 : i32
    %c0_i32_0 = arith.constant 0 : i32
    %c0_i32_1 = arith.constant 0 : i32
    return %c0_i32, %c0_i32_0 : i32, i32
  }
  func.func @transform_3(%arg0: i32) -> (i32, i32, i32) {
    %c0_i32 = arith.constant 0 : i32
    %c0_i32_0 = arith.constant 0 : i32
    %c0_i32_1 = arith.constant 0 : i32
    return %arg0, %c0_i32, %c0_i32_0 : i32, i32, i32
  }
  func.func @transform_4(%arg0: i32) -> (i32, i32, i32) {
    %c0_i32 = arith.constant 0 : i32
    %c0_i32_0 = arith.constant 0 : i32
    %c0_i32_1 = arith.constant 0 : i32
    return %arg0, %c0_i32, %c0_i32_0 : i32, i32, i32
  }
  func.func @transform_5(%arg0: i32) -> (i32, i32, i32) {
    %c0_i32 = arith.constant 0 : i32
    %c0_i32_0 = arith.constant 0 : i32
    %c0_i32_1 = arith.constant 0 : i32
    return %arg0, %c0_i32, %c0_i32_0 : i32, i32, i32
  }
}

</mosaic_0001>

<bundles_post_ra>
// kernel: enterprise_attention.1
= control target key start
LH: loop header
LB: loop body
LE: loop exit
PB: predicated region body
PF: predicated region fallthrough
CT: control target
= control target key end

     0   :  { %11 = vsyncpa [#allocation6], 0  ;;  %s1167_s0 = inlined_call_operand.vmem [shape: f32[2,8,32], index: 0, kind: input, shape index: {}]   ;;  %s1168_s1 = inlined_call_operand.vmem [shape: bf16[32,96], index: 1, kind: input, shape index: {}]   ;;  %s1169_s2 = inlined_call_operand.vmem [shape: bf16[32,32], index: 2, kind: input, shape index: {}]   ;;  %s1170_s3 = inlined_call_operand.hbm [shape: f32[2,8,32], index: 3, kind: output, shape index: {0}]   ;;  %s1171_s4 = inlined_call_operand.hbm [shape: f32[2,8,32], index: 4, kind: output, shape index: {1}]   ;;  %s1172_s5 = inlined_call_operand.hbm [shape: f32[2,8,32], index: 5, kind: output, shape index: {2}]  }
   0x1   :  { %13 = vsyncpa [#allocation6 + $0x1], 0 }
   0x2   :  { %14 = vsyncpa [#allocation8], 0 }
   0x3   :  { %16 = vsyncpa [#allocation8 + $0x1], 0  ;;  %s959_s18 = smov 0   ;;  %s961_s19 = smov 0  }
   0x4   :  { %s963_s20 = smov 0   ;;  %s965_s21 = smov 0  }
   0x5 LB: > { %s980_s22 = sadd.s32 4294967295, %s920_s21   ;;  %s677_s23 = sadd.s32 4294967294, %s920_s21   ;;  %s920_s21 = sphi %s965_s21, %s1178_s21   ;;  %s916_s20 = sphi %s963_s20, %s1177_s20   ;;  %s912_s19 = sphi %s961_s19, %s1176_s19   ;;  %s908_s18 = sphi %s959_s18, %s1175_s18  }
   0x6   : > { %s984_s24 = sadd.s32 1, %s920_s21   ;;  %s97_s25 = sadd.s32 1, %s916_s20 }
   0x7   : > { %s94_s26 = ssub.s32 %s920_s21, %s984_s24  ;;  %p107_p0 = scmp.ne.s32.totalorder %s916_s20, %s912_s19 }
   0x8   : > { %p95_p1 = scmp.eq.s32.totalorder %s94_s26, 0  ;;  %p108_p2 = scmp.eq.s32.totalorder %s980_s22, 1 }
   0x9   : > { %p113_p3 = scmp.ne.s32.totalorder %s912_s19, %s908_s18  ;;  %p114_p4 = scmp.eq.s32.totalorder %s677_s23, 1 }
   0xa   : > { %s997_s27 = scalar_select %p95_p1, %s916_s20, %s97_s25  }
   0xb   : > { %p999_p5 = por %p108_p2, %p107_p0  ;;  %p1003_p6 = por %p114_p4, %p113_p3 }
   0xc   : > { %p680_p7 = scmp.ge.s32.totalorder %s920_s21, 1  ;;  %p197_p8 = scmp.lt.s32.totalorder %s920_s21, 3 }
   0xe   : > { %p198_p9 = pnand %p680_p7, %p197_p8 }
   0xf   : > { %p234_p10 = scmp.lt.s32.totalorder (!%p198_p9), %s980_s22, 1  ;;  %s924_s14 = smov (!%p198_p9), 64  }
  0x10   : > { %201 = sbr.rel (%p198_p9) target bundleno = 1119 (0x45f), region = 32  ;;  %s925_s15 = smov (!%p198_p9), 96  }
  0x11   : > { %s217_s16 = sand.u32 (!%p198_p9), 1, %s912_s19   ;;  %s1064_s11 = sshll.u32 (!%p198_p9), %s980_s22, 7 }
  0x12   : > { %s1043_s17 = sshll.u32 (!%p198_p9), %s217_s16, 3 }
  0x13   : > { %s226_s25 = scalar_lea.vmem (!%p198_p9), [#allocation7], %s1043_s17  ;;  %s233_s8 = scalar_lea.vmem (!%p198_p9), [#allocation9], %s1043_s17 }
  0x15   : > { %v794_v0 = vld [vmem:[%s1168_s1 + $0x8] sm:$0xff]   ;;  %v922_v1 = vmov 0.0   ;;  %v795_v2 = vld [vmem:[%s1168_s1] sm:$0xff]   ;;  %vm923_vm0 = vmmov 0   ;;  %s235_s9 = scalar_select %p234_p10, %s980_s22, 1  ;;  %vm257_vm1 = vcmask 261120   ;;  %v373_v17 = vlaneseq }
  0x16   : > { %713 = vmatprep.subr.bf16.mxu0 %v922_v1  ;;  %721 = vmatprep.subr.bf16.mxu1 %v922_v1  ;;  %vm311_vm2 = vcmask 257024   ;;  %vm399_vm3 = vcmask 1043456   ;;  %vm379_vm5 = vcmask 64512   ;;  %v796_v34 = vld [vmem:[%s1169_s2 + $0x8] sm:$0xff]   ;;  %v797_v35 = vld [vmem:[%s1169_s2] sm:$0xff]  }
  0x17   : > { %714 = vmatpush3.bf16.msra.mxu0 %v794_v0  ;;  %717 = vmatprep.mubr.msk.bf16.mxu0 %vm923_vm0, %v922_v1  ;;  %s684_s10 = sshll.u32 %s235_s9, 3  ;;  %v374_v18 = vshrl.u32 %v373_v17, 7  ;;  %v376_v19 = vand.u32 127, %v373_v17  ;;  %s557_s9 = sshll.u32 %s233_s8, 4  ;;  %s1074_s9 = int_to_ptr.vmem [resolvable:$true] %s557_s9 }
  0x18   : > { %715 = vmatprep.subr.bf16.mxu0 %v922_v1  ;;  %723 = vmatprep.mubr.msk.bf16.mxu1 %vm923_vm0, %v922_v1  ;;  %s237_s13 = scalar_lea.vmem %s1167_s0, %s684_s10  ;;  %s512_s10 = sand.u32 1, %s980_s22  }
  0x19   : > { %v239_v3 = vld [vmem:[%s237_s13] sm:$0xff]  ;;  %vm377_vm4 = vcmp.le.s32.totalorder %v376_v19, %v374_v18  ;;  %s1076_s26 = scalar_lea.sflag [#allocation8], %s512_s10  ;;  %s926_s22 = smov [#allocation7]  }
  0x1a   : > { %v240_v4 = vpack.c.bf16 %v239_v3, %v239_v3  ;;  %s808_s6 = sshll.u32 %s926_s22, 4  ;;  %s809_s6 = int_to_ptr.vmem [resolvable:$false] %s808_s6 }
  0x1b   : > { %716 = vmatpush3.bf16.msra.mxu0 %v795_v2  ;;  %s810_s7 = scalar_lea.vmem %s809_s6, 256 }
  0x1c   : > { %727 = vmatprep.subr.bf16.mxu0 %v922_v1 }
  0x1e   : > { %718 = vmatmul.mubr.msk.bf16.vlgmr.msra.gmra.mxu0 %vm257_vm1, %v240_v4 }
  0x1f   : > { %729 = vmatprep.mubr.msk.bf16.mxu0 %vm923_vm0, %v922_v1 }
  0xde   : > { %v295_v5 = vpop.f32.mrf.mxu0 }
  0xdf   : > { %v310_v6 = vpack.c.bf16 %v295_v5, %v295_v5 }
  0xe0   : > { %v719_v7 = vpop.f32.mrf.mxu0 }
  0xe1   : > { %320 = vrot.lane.b32.xlu1 %v310_v6, %s924_s14  ;;  %316 = vrot.lane.b32.xlu0 %v310_v6, %s925_s15  ;;  %312 = vst.msk [vmem:[#allocation2] sm:$0xf] %vm311_vm2, %v310_v6 }
  0xe2   : > { %v298_v8 = vpop.f32.mrf.mxu0 }
  0xe4   : > { %v720_v9 = vpop.f32.mrf.mxu0 }
  0xe8   : > { %v324_v16 = vld [vmem:[#allocation2] sm:$0xf] }
 0x153   : > { %v321_v10 = vpop.permute.xlu1 %320  ;;  %v317_v11 = vpop.permute.xlu0 %316 }
 0x154   : > { %323 = vst.msk [vmem:[#allocation4] sm:$0xf] %vm311_vm2, %v321_v10  ;;  %319 = vst.msk [vmem:[#allocation3] sm:$0xf] %vm311_vm2, %v317_v11 }
 0x15b   : > { %v325_v12 = vld [vmem:[#allocation3] sm:$0xf]  ;;  %v326_v13 = vld [vmem:[#allocation4] sm:$0xf] }
 0x15c   : > { %v331_v14 = vsel %vm257_vm1, %v325_v12, 0  ;;  %v401_v15 = vsel %vm399_vm3, %v326_v13, 0 }
 0x15d   : > { %722 = vmatpush3.bf16.xpose.msra.mxu1 %v331_v14  ;;  %728 = vmatpush3.bf16.msra.mxu0 %v401_v15 }
 0x15e   : > { %733 = vmatprep.subr.bf16.mxu1 %v922_v1 }
 0x164   : > { %724 = vmatmul.mubr.msk.bf16.vlgmr.msra.gmra.mxu1 %vm257_vm1, %v324_v16 }
 0x165   : > { %737 = vmatprep.mubr.msk.bf16.mxu1 %vm923_vm0, %v922_v1  ;;  %734 = vmatpush3.bf16.msra.mxu1 %v796_v34 }
 0x166   : > { %735 = vmatprep.subr.bf16.mxu1 %v922_v1 }
 0x169   : > { %736 = vmatpush3.bf16.msra.mxu1 %v797_v35 }
 0x224   : > { %v367_v20 = vpop.f32.mrf.mxu1 }
 0x225   : > { %v378_v21 = vsel %vm377_vm4, %v367_v20, -1e+30 }
 0x226   : > { %v725_v22 = vpop.f32.mrf.mxu1  ;;  %v380_v23 = vsel %vm379_vm5, %v378_v21, -inf }
 0x227   : > { %381 = vmax.xlane.f32.xlu0 %v380_v23 }
 0x228   : > { %v370_v24 = vpop.f32.mrf.mxu1 }
 0x22a   : > { %v726_v25 = vpop.f32.mrf.mxu1 }
 0x23d   : > { %302 = vrot.lane.b32.xlu0 %v295_v5, %s925_s15  ;;  %s544_s15 = sshll.u32 %s226_s25, 4  ;;  %s545_s15 = int_to_ptr.vmem [resolvable:$true] %s544_s15 }
 0x23e   : > { %s804_s30 = scalar_lea.vmem %s545_s15, 128  ;;  %p811_p0 = scmp.lt.s32.totalorder %s545_s15, %s809_s6 }
 0x23f   : > { %p805_p11 = scmp.ne.s32.totalorder %s545_s15, %s804_s30  ;;  %p812_p1 = scmp.lt.s32.totalorder %s810_s7, %s804_s30 }
 0x241   : > { %p806_p12 = pnand %p805_p11, %p999_p5  ;;  %p813_p2 = por %p812_p1, %p811_p0 }
 0x243   : > { %p807_p13 = pneg %p806_p12 }
 0x245   : > { %p814_p3 = pnand %p813_p2, %p807_p13 }
 0x2b0   : > { %v382_v26 = vpop.xlane.xlu0 %381 }
 0x2b1   : > { %v383_v27 = vmax.f32 %v382_v26, -1e+30 }
 0x2b3   : > { %v387_v28 = vsub.f32 %v378_v21, %v383_v27  ;;  %v384_v38 = vsub.f32 -1e+30, %v383_v27 }
 0x2b4   : > { %v303_v29 = vpop.permute.xlu0 %302 }
 0x2b5   : > { %v388_v30 = vmul.f32 1.442695, %v387_v28  ;;  %305 = vst.msk [vmem:[%s226_s25] sm:$0xff] %vm257_vm1, %v303_v29  ;;  %v385_v39 = vmul.f32 1.442695, %v384_v38 }
 0x2b7   : > { %798 = vpow2.f32 %v388_v30 }
 0x2b8   : > { %800 = vpow2.f32 %v385_v39 }
 0x2c4   : > { %v799_v31 = vpop.eup %798 }
 0x2c5   : > { %v391_v32 = vsel %vm379_vm5, %v799_v31, 0.0  ;;  %v395_v33 = vpack.c.bf16 %v799_v31, %v799_v31  ;;  %v801_v40 = vpop.eup %800 }
 0x2c6   : > { %392 = vadd.xlane.f32.xlu1 %v391_v32  ;;  %v390_v41 = vmul.f32 0.0, %v801_v40 }
 0x2c7   : > { %730 = vmatmul.mubr.msk.bf16.vlgmr.msra.gmra.mxu0 %vm379_vm5, %v395_v33 }
 0x2d7   : > { %306 = vrot.lane.b32.xlu1 %v295_v5, %s924_s14  ;;  %s1070_s14 = scalar_lea.hbm %s1171_s4, %s1064_s11 }
 0x34f   : > { %v393_v36 = vpop.xlane.xlu1 %392 }
 0x350   : > { %v394_v42 = vadd.f32 %v393_v36, %v390_v41 }
 0x352   : > { %802 = vrcp.f32 %v394_v42 }
 0x353   : > { %v307_v37 = vpop.permute.xlu1 %306 }
 0x354   : > { %309 = vst.msk [vmem:[%s233_s8] sm:$0xff] %vm257_vm1, %v307_v37 }
 0x35f   : > { %v803_v45 = vpop.eup %802 }
 0x387   : > { %v437_v43 = vpop.f32.mrf.mxu0 }
 0x388   : > { %v443_v44 = vadd.f32 %v437_v43, %v390_v41 }
 0x389   : > { %v731_v46 = vpop.f32.mrf.mxu0 }
 0x38a   : > { %v445_v47 = vmul.f32 %v803_v45, %v443_v44 }
 0x38b   : > { %v440_v48 = vpop.f32.mrf.mxu0 }
 0x38c   : > { %v446_v49 = vpack.c.bf16 %v445_v47, %v445_v47 }
 0x38d   : > { %v732_v50 = vpop.f32.mrf.mxu0 }
 0x38e   : > { %738 = vmatmul.mubr.msk.bf16.vlgmr.msra.gmra.mxu1 %vm257_vm1, %v446_v49 }
 0x38f   : > { %817 = shalt.err (!%p814_p3)
}
 0x390   : > { %s818_s25 = scalar_lea.hbm %s1070_s14, 128  ;;  %s822_s12 = scalar_lea.hbm %s1171_s4, 256 }
 0x391   : > { %p819_p4 = scmp.ne.s32.totalorder %s1070_s14, %s818_s25  ;;  %p823_p9 = scmp.lt.s32.totalorder %s1070_s14, %s1171_s4 }
 0x392   : > { %p824_p10 = scmp.lt.s32.totalorder %s822_s12, %s818_s25 }
 0x393   : > { %p820_p7 = pnand %p819_p4, %p999_p5 }
 0x394   : > { %p825_p11 = por %p824_p10, %p823_p9 }
 0x395   : > { %p821_p8 = pneg %p820_p7 }
 0x397   : > { %p826_p12 = pnand %p825_p11, %p821_p8 }
 0x399   : > { %829 = shalt.err (!%p826_p12)
}
 0x39a   : > { %742 = dma.vmem_to_hbm [thread:$0]  (%p999_p5), %s545_s15, 128, %s1070_s14, %s1076_s26  }
 0x39b   : > { %s555_s7 = scalar_lea.hbm %s1172_s5, %s1064_s11  ;;  %s830_s8 = scalar_lea.vmem %s1074_s9, 128 }
 0x39c   : > { %p831_p13 = scmp.ne.s32.totalorder %s1074_s9, %s830_s8  ;;  %s927_s25 = smov [#allocation9]  }
 0x39d   : > { %s834_s10 = sshll.u32 %s927_s25, 4  ;;  %s835_s10 = int_to_ptr.vmem [resolvable:$false] %s834_s10 }
 0x39e   : > { %p832_p0 = pnand %p831_p13, %p999_p5  ;;  %s836_s12 = scalar_lea.vmem %s835_s10, 256 }
 0x39f   : > { %p837_p2 = scmp.lt.s32.totalorder %s1074_s9, %s835_s10  ;;  %p838_p3 = scmp.lt.s32.totalorder %s836_s12, %s830_s8 }
 0x3a0   : > { %p833_p1 = pneg %p832_p0 }
 0x3a1   : > { %p839_p4 = por %p838_p3, %p837_p2 }
 0x3a3   : > { %p840_p7 = pnand %p839_p4, %p833_p1 }
 0x3a5   : > { %843 = shalt.err (!%p840_p7)
}
 0x3a6   : > { %s844_s13 = scalar_lea.hbm %s555_s7, 128  ;;  %s848_s22 = scalar_lea.hbm %s1172_s5, 256 }
 0x3a7   : > { %p845_p8 = scmp.ne.s32.totalorder %s555_s7, %s844_s13  ;;  %p849_p11 = scmp.lt.s32.totalorder %s555_s7, %s1172_s5 }
 0x3a8   : > { %p850_p12 = scmp.lt.s32.totalorder %s848_s22, %s844_s13 }
 0x3a9   : > { %p846_p9 = pnand %p845_p8, %p999_p5 }
 0x3aa   : > { %p851_p13 = por %p850_p12, %p849_p11 }
 0x3ab   : > { %p847_p10 = pneg %p846_p9 }
 0x3ad   : > { %p852_p0 = pnand %p851_p13, %p847_p10 }
 0x3af   : > { %855 = shalt.err (!%p852_p0)
}
 0x3b0   : > { %743 = dma.vmem_to_hbm [thread:$0]  (%p999_p5), %s1074_s9, 128, %s555_s7, %s1076_s26  }
 0x3b1   : > { %s219_s8 = scalar_lea.vmem [#allocation5], %s1043_s17  ;;  %s1121_s14 = scalar_lea.hbm %s1170_s3, %s1064_s11 }
 0x3b2   : > { %s531_s25 = sshll.u32 %s219_s8, 4  ;;  %s508_s13 = scalar_lea.sflag [#allocation6], %s217_s16  ;;  %s1123_s25 = int_to_ptr.vmem [resolvable:$true] %s531_s25 }
 0x3b3   : > { %s856_s15 = scalar_lea.vmem %s1123_s25, 128  ;;  %s928_s17 = smov [#allocation5]  }
 0x3b4   : > { %p857_p1 = scmp.ne.s32.totalorder %s1123_s25, %s856_s15  ;;  %s860_s9 = sshll.u32 %s928_s17, 4  ;;  %s861_s9 = int_to_ptr.vmem [resolvable:$false] %s860_s9 }
 0x3b5   : > { %s862_s11 = scalar_lea.vmem %s861_s9, 256  ;;  %p863_p4 = scmp.lt.s32.totalorder %s1123_s25, %s861_s9 }
 0x3b6   : > { %p858_p2 = pnand %p857_p1, %p999_p5  ;;  %p864_p7 = scmp.lt.s32.totalorder %s862_s11, %s856_s15 }
 0x3b8   : > { %p859_p3 = pneg %p858_p2  ;;  %p865_p8 = por %p864_p7, %p863_p4 }
 0x3ba   : > { %p866_p9 = pnand %p865_p8, %p859_p3 }
 0x44e   : > { %v500_v51 = vpop.f32.mrf.mxu1 }
 0x44f   : > { %506 = vst.msk [vmem:[%s219_s8] sm:$0xff] %vm257_vm1, %v500_v51 }
 0x450   : > { %v739_v52 = vpop.f32.mrf.mxu1 }
 0x451   : > { %869 = shalt.err (!%p866_p9)
}
 0x452   : > { %s870_s26 = scalar_lea.hbm %s1121_s14, 128  ;;  %s874_s22 = scalar_lea.hbm %s1170_s3, 256 }
 0x453   : > { %p871_p10 = scmp.ne.s32.totalorder %s1121_s14, %s870_s26  ;;  %p875_p13 = scmp.lt.s32.totalorder %s1121_s14, %s1170_s3 }
 0x454   : > { %p876_p0 = scmp.lt.s32.totalorder %s874_s22, %s870_s26 }
 0x455   : > { %p872_p11 = pnand %p871_p10, %p999_p5 }
 0x456   : > { %p877_p1 = por %p876_p0, %p875_p13 }
 0x457   : > { %p873_p12 = pneg %p872_p11 }
 0x459   : > { %p878_p2 = pnand %p877_p1, %p873_p12 }
 0x45b   : > { %881 = shalt.err (!%p878_p2)
}
 0x45c   : > { %741 = dma.vmem_to_hbm [thread:$0]  (%p999_p5), %s1123_s25, 128, %s1121_s14, %s508_s13   ;;  %v503_v53 = vpop.f32.mrf.mxu1 }
 0x45e   : > { %v740_v54 = vpop.f32.mrf.mxu1 }
 0x45f PF: > { %p757_p3 = scmp.ge.s32.totalorder %s920_s21, 2  ;;  %s569_s8 = sand.u32 1, %s908_s18  }
 0x460   : > { %s570_s10 = scalar_lea.sflag [#allocation6], %s569_s8 }
 0x461   : > { %p748_p4 = pnand %p757_p3, %p1003_p6 }
 0x463   : > { %p749_p7 = pneg %p748_p4 }
 0x465   : > { %899 = dma.done.wait (%p749_p7), %s570_s10, 128  }
 0x466   : > { %901 = vsyncadd (%p749_p7), %s570_s10, 4294967168  ;;  %s578_s28 = sand.u32 1, %s677_s23  }
 0x467   : > { %s579_s12 = scalar_lea.sflag [#allocation8], %s578_s28 }
 0x468   : > { %903 = dma.done.wait (%p749_p7), %s579_s12, 256  }
 0x469   : > { %905 = vsyncadd (%p749_p7), %s579_s12, 4294967040  ;;  %p19_p5 = scmp.ge.s32.totalorder %s984_s24, 4   ;;  %s1175_s18 = smov %s912_s19 }
 0x46a   : > { %s1176_s19 = smov %s916_s20  ;;  %s1177_s20 = smov %s997_s27 }
 0x46b   : > { %s1178_s21 = smov %s984_s24  ;;  %21 = sbr.rel (!%p19_p5) target bundleno = 5 (0x5), region = 99 }
 0x470   :  { %593 = vsyncpa [#allocation6], 1 }
 0x471   :  { %595 = vsyncpa [#allocation6 + $0x1], 1 }
 0x472   :  { %596 = vsyncpa [#allocation8], 1 }
 0x473   :  { %598 = vsyncpa [#allocation8 + $0x1], 1 }

</bundles_post_ra>
